<compile_context>
chip_gen: v7x
topology: tpu7x:2x2x1
jax: 0.10.0
libtpu: 0.0.40
codegen_flags: <defaults>
</compile_context>

<pallas_src>
import math
import jax
import jax.numpy as jnp
from jax.experimental import pallas as pl
from jax.experimental.pallas import tpu as pltpu

# ----------------------------- model config (small) -------------------------
B = 2              # batch
S = 8              # sequence length
D = 32             # model dim
N_HEADS = 4
HEAD_DIM = D // N_HEADS
HIDDEN = 4 * D     # FFN hidden dim (4 * dim, as passed by TransformerBlock)
EPS = 1e-5
START_POS = 0
ROPE_THETA = 10000.0
BS = B * S         # folded batch*seq rows


def _rmsnorm(x, w, eps):
    # x: (BS, D), w: (1, D)
    var = jnp.mean(x * x, axis=-1, keepdims=True)
    return x * jax.lax.rsqrt(var + eps) * w


# ----------------------------- fused kernel ---------------------------------
def transformer_block_kernel(
    x_ref, attn_nw_ref, ffn_nw_ref,
    w5_ref, wo_ref, w13_ref, w2_ref,
    cos_ref, sin_ref, blockmask_ref, mask_ref,
    o_ref,
):
    x = x_ref[...]                                   # (BS, D)

    # ---- attention branch -------------------------------------------------
    xn = _rmsnorm(x, attn_nw_ref[...], EPS)
    # Fused projection: [q*scale | k | v | swap(q*scale) | swap(k)] in one matmul.
    qkv5 = jnp.dot(xn, w5_ref[...], preferred_element_type=jnp.float32)   # (BS, 5D)

    qk = qkv5[:, : 2 * D]                                                  # (BS, 2D)
    v = qkv5[:, 2 * D: 3 * D]                                              # (BS, D)
    qk_sw = qkv5[:, 3 * D:]                                                # (BS, 2D) pair-swapped
    # RoPE: out = qk * cos_dup + swap(qk) * sin_signed   (scale already in Wq)
    qk = qk * cos_ref[...] + qk_sw * sin_ref[...]
    q = qk[:, :D]                                                          # (BS, D)
    k = qk[:, D:]                                                          # (BS, D)

    blockmask = blockmask_ref[...]                                         # (H*BS, D)
    k_big = jnp.concatenate([k] * N_HEADS, axis=0) * blockmask             # (H*BS, D)
    v_big = jnp.concatenate([v] * N_HEADS, axis=0) * blockmask             # (H*BS, D)

    # scores[i, h*BS + j] = <q_h[i], k_h[j]> / sqrt(hd)  + block-diag causal mask
    scores = jax.lax.dot_general(
        q, k_big, (((1,), (1,)), ((), ())),
        preferred_element_type=jnp.float32) + mask_ref[...]                # (BS, H*BS)

    # Row-max over all heads is a per-row constant -> per-head softmax is unchanged.
    scores = scores - jnp.max(scores, axis=-1, keepdims=True)
    p = jnp.exp(scores)                                                    # (BS, H*BS)

    ctx = jnp.dot(p, v_big, preferred_element_type=jnp.float32)            # (BS, D)
    denom = jnp.dot(p, blockmask, preferred_element_type=jnp.float32)      # (BS, D)
    attn = ctx * pl.reciprocal(denom, approx=True)
    attn = jnp.dot(attn, wo_ref[...], preferred_element_type=jnp.float32)  # (BS, D)

    h_mid = x + attn

    # ---- feed-forward branch (SwiGLU) --------------------------------------
    hn = _rmsnorm(h_mid, ffn_nw_ref[...], EPS)
    gu = jnp.dot(hn, w13_ref[...], preferred_element_type=jnp.float32)     # (BS, 2*HIDDEN)
    g = gu[:, :HIDDEN]
    u = gu[:, HIDDEN:]
    g = g * pl.reciprocal(1.0 + jnp.exp(-g), approx=True)                  # SiLU via EUP
    ff = jnp.dot(g * u, w2_ref[...], preferred_element_type=jnp.float32)   # (BS, D)

    o_ref[...] = h_mid + ff


# ----------------------------- wrapper ---------------------------------------
def transformer_block(x, params, cos2, sin2, blockmask, mask_e):
    (attn_nw, ffn_nw, wq, wk, wv, wo, w1, w2, w3) = params

    # One-time weight folding in the wrapper (cheap XLA work, hoisted out of the kernel):
    #   * attention scale folded into Wq (RoPE is linear, so it commutes),
    #   * RoPE pair-swap copies of Wq/Wk appended so the kernel needs no swap matmul.
    scale = 1.0 / math.sqrt(HEAD_DIM)
    pswap = build_pair_swap(D)                        # (D, D) even<->odd within each pair
    wq_s = wq * scale
    w5 = jnp.concatenate([wq_s, wk, wv, wq_s @ pswap, wk @ pswap], axis=1)  # (D, 5D)
    w13 = jnp.concatenate([w1, w3], axis=1)           # (D, 2*HIDDEN)

    x2d = x.reshape(BS, D)
    operands = (x2d, attn_nw, ffn_nw, w5, wo, w13, w2,
                cos2, sin2, blockmask, mask_e)

    # Advisory cost estimate (flops for the 7 matmuls, transcendentals for exp/recip/rsqrt).
    mm = [(BS, 5 * D, D),              # fused qkv + rope-swap projection
          (BS, N_HEADS * BS, D),       # scores
          (BS, D, N_HEADS * BS),       # ctx = p @ Vbig
          (BS, D, N_HEADS * BS),       # denom = p @ blockmask
          (BS, D, D),                  # wo
          (BS, 2 * HIDDEN, D),         # w1|w3
          (BS, D, HIDDEN)]             # w2
    flops = sum(2 * m * n * k for (m, n, k) in mm)
    transcendentals = BS * (N_HEADS * BS + D + 2 * HIDDEN) + 2 * BS
    bytes_accessed = sum(int(a.size) * 4 for a in operands) + BS * D * 4

    vmem = pl.BlockSpec(memory_space=pltpu.MemorySpace.VMEM)
    out2d = pl.pallas_call(
        transformer_block_kernel,
        out_shape=jax.ShapeDtypeStruct((BS, D), jnp.float32),
        in_specs=[vmem] * len(operands),
        out_specs=vmem,
        cost_estimate=pl.CostEstimate(flops=flops,
                                      transcendentals=transcendentals,
                                      bytes_accessed=bytes_accessed),
    )(*operands)
    return out2d.reshape(B, S, D)


# ----------------------------- table builders (glue, plain JAX) --------------
def build_rope_tables(seqlen, head_dim, n_heads, batch, start_pos=0, theta=ROPE_THETA):
    inv = 1.0 / (theta ** (jnp.arange(0, head_dim, 2, dtype=jnp.float32) / head_dim))
    t = jnp.arange(start_pos, start_pos + seqlen, dtype=jnp.float32)
    freqs = jnp.outer(t, inv)                                  # (S, hd/2)
    cos = jnp.cos(freqs)
    sin = jnp.sin(freqs)
    # Duplicated cos over pairs: [c0,c0,c1,c1,...]; signed sin: [-s0,+s0,-s1,+s1,...]
    cos_dup = jnp.repeat(cos, 2, axis=-1)                                      # (S, hd)
    sin_sgn = jnp.stack([-sin, sin], axis=-1).reshape(seqlen, head_dim)        # (S, hd)
    # Tile across (q,k regions x heads) and across batch rows -> (B*S, 2D)
    cos2 = jnp.tile(cos_dup, (batch, 2 * n_heads))
    sin2 = jnp.tile(sin_sgn, (batch, 2 * n_heads))
    return cos, sin, cos2, sin2


def build_pair_swap(width):
    j = jnp.arange(width)
    # P[r, c] = 1 iff r == c ^ 1  =>  (x @ P)[:, c] = x[:, c^1]
    return (j[:, None] == (j[None, :] ^ 1)).astype(jnp.float32)


def build_head_blockmask(batch, seqlen, n_heads, head_dim):
    # (H*BS, D): 1 where column d belongs to the head of row-block h.
    r = jnp.arange(n_heads * batch * seqlen)[:, None]
    d = jnp.arange(n_heads * head_dim)[None, :]
    return ((r // (batch * seqlen)) == (d // head_dim)).astype(jnp.float32)


def build_block_causal_mask(batch, seqlen, n_heads, start_pos=0):
    # (BS, H*BS): block-diagonal over batch, causal within a batch, tiled over heads.
    rows = jnp.arange(batch * seqlen)
    cols = jnp.arange(batch * seqlen)
    same_batch = (rows[:, None] // seqlen) == (cols[None, :] // seqlen)
    causal = (cols[None, :] % seqlen) <= (rows[:, None] % seqlen) + start_pos
    base = jnp.where(same_batch & causal, 0.0, -1e30).astype(jnp.float32)
    return jnp.tile(base, (1, n_heads))


def build_causal_mask(seqlen, start_pos=0):
    row = jnp.arange(seqlen)[:, None]
    col = jnp.arange(seqlen)[None, :]
    return jnp.where(col > row + start_pos, -jnp.inf, 0.0).astype(jnp.float32)


# ----------------------------- pure-JAX reference ---------------------------
def reference_block(x, params, cos, sin, mask):
    (attn_nw, ffn_nw, wq, wk, wv, wo, w1, w2, w3) = params

    def rms(t, w):
        return t * jax.lax.rsqrt(jnp.mean(t * t, -1, keepdims=True) + EPS) * w[0]

    def rope(t):  # t: (B, S, nh, hd)
        tr = t[..., 0::2]
        ti = t[..., 1::2]
        c = cos[None, :, None, :]
        s = sin[None, :, None, :]
        out_r = tr * c - ti * s
        out_i = tr * s + ti * c
        return jnp.stack([out_r, out_i], axis=-1).reshape(t.shape)

    xn = rms(x, attn_nw)
    q = (xn @ wq).reshape(B, S, N_HEADS, HEAD_DIM)
    k = (xn @ wk).reshape(B, S, N_HEADS, HEAD_DIM)
    v = (xn @ wv).reshape(B, S, N_HEADS, HEAD_DIM)
    q, k = rope(q), rope(k)
    scores = jnp.einsum("bqhd,bkhd->bhqk", q, k) / math.sqrt(HEAD_DIM) + mask
    p = jax.nn.softmax(scores, axis=-1)
    o = jnp.einsum("bhqk,bkhd->bqhd", p, v).reshape(B, S, D)
    h = x + o @ wo
    hn = rms(h, ffn_nw)
    ff = (jax.nn.silu(hn @ w1) * (hn @ w3)) @ w2
    return h + ff


# ----------------------------- main ------------------------------------------
if __name__ == "__main__":
    key = jax.random.PRNGKey(0)
    ks = jax.random.split(key, 9)
    scale = 0.05

    x = jax.random.normal(ks[0], (B, S, D), jnp.float32)

    attn_nw = jnp.ones((1, D), jnp.float32)   # RMSNorm weights init to ones
    ffn_nw = jnp.ones((1, D), jnp.float32)
    wq = jax.random.normal(ks[1], (D, D), jnp.float32) * scale
    wk = jax.random.normal(ks[2], (D, D), jnp.float32) * scale
    wv = jax.random.normal(ks[3], (D, D), jnp.float32) * scale
    wo = jax.random.normal(ks[4], (D, D), jnp.float32) * scale
    w1 = jax.random.normal(ks[5], (D, HIDDEN), jnp.float32) * scale
    w2 = jax.random.normal(ks[6], (HIDDEN, D), jnp.float32) * scale
    w3 = jax.random.normal(ks[7], (D, HIDDEN), jnp.float32) * scale
    params = (attn_nw, ffn_nw, wq, wk, wv, wo, w1, w2, w3)

    cos, sin, cos2, sin2 = build_rope_tables(S, HEAD_DIM, N_HEADS, B, START_POS)
    blockmask = build_head_blockmask(B, S, N_HEADS, HEAD_DIM)
    mask_e = build_block_causal_mask(B, S, N_HEADS, START_POS)
    mask_ref = build_causal_mask(S, START_POS)

    out = transformer_block(x, params, cos2, sin2, blockmask, mask_e)
    out = jax.block_until_ready(out)

    ref = jax.block_until_ready(reference_block(x, params, cos, sin, mask_ref))
    err = float(jnp.max(jnp.abs(out - ref)))
    if not (err < 3e-3):
        raise AssertionError(f"mismatch vs reference: max abs err = {err}")

    print("KERNEL_OK")
</pallas_src>

<mosaic_0001>
module attributes {stable_mosaic.version = 11 : i64} {
  func.func @transformer_block_kernel(%arg0: memref<16x32xf32, #tpu.memory_space<vmem>>, %arg1: memref<1x32xf32, #tpu.memory_space<vmem>>, %arg2: memref<1x32xf32, #tpu.memory_space<vmem>>, %arg3: memref<32x160xf32, #tpu.memory_space<vmem>>, %arg4: memref<32x32xf32, #tpu.memory_space<vmem>>, %arg5: memref<32x256xf32, #tpu.memory_space<vmem>>, %arg6: memref<128x32xf32, #tpu.memory_space<vmem>>, %arg7: memref<16x64xf32, #tpu.memory_space<vmem>>, %arg8: memref<16x64xf32, #tpu.memory_space<vmem>>, %arg9: memref<64x32xf32, #tpu.memory_space<vmem>>, %arg10: memref<16x64xf32, #tpu.memory_space<vmem>>, %arg11: memref<16x32xf32, #tpu.memory_space<vmem>>) attributes {dimension_semantics = [], scalar_prefetch = 0 : i64, scratch_operands = 0 : i64, tpu.core_type = #tpu.core_type<tc>} {
    %c0 = arith.constant 0 : index
    %c0_0 = arith.constant 0 : index
    %0 = vector.load %arg0[%c0, %c0_0] : memref<16x32xf32, #tpu.memory_space<vmem>>, vector<16x32xf32>
    %c0_1 = arith.constant 0 : index
    %c0_2 = arith.constant 0 : index
    %1 = vector.load %arg1[%c0_1, %c0_2] : memref<1x32xf32, #tpu.memory_space<vmem>>, vector<1x32xf32>
    %2 = arith.mulf %0, %0 : vector<16x32xf32>
    %cst = arith.constant dense<0.000000e+00> : vector<16xf32>
    %3 = vector.multi_reduction <add>, %2, %cst [1] : vector<16x32xf32> to vector<16xf32>
    %4 = vector.shape_cast %3 : vector<16xf32> to vector<16x1xf32>
    %cst_3 = arith.constant 3.200000e+01 : f32
    %5 = vector.broadcast %cst_3 : f32 to vector<16x1xf32>
    %6 = arith.divf %4, %5 : vector<16x1xf32>
    %cst_4 = arith.constant 9.99999974E-6 : f32
    %7 = vector.broadcast %cst_4 : f32 to vector<16x1xf32>
    %8 = arith.addf %6, %7 : vector<16x1xf32>
    %9 = math.rsqrt %8 : vector<16x1xf32>
    %10 = vector.broadcast %9 : vector<16x1xf32> to vector<16x32xf32>
    %11 = arith.mulf %0, %10 : vector<16x32xf32>
    %12 = vector.broadcast %1 : vector<1x32xf32> to vector<16x32xf32>
    %13 = arith.mulf %11, %12 : vector<16x32xf32>
    %c0_5 = arith.constant 0 : index
    %c0_6 = arith.constant 0 : index
    %14 = vector.load %arg3[%c0_5, %c0_6] : memref<32x160xf32, #tpu.memory_space<vmem>>, vector<32x160xf32>
    %cst_7 = arith.constant dense<0.000000e+00> : vector<16x160xf32>
    %15 = tpu.matmul %13, %14, %cst_7 {dimension_numbers = #tpu.dot_dimension_numbers<[1], [0], [0], [1], [0, 0, 1, 1], [], []>} : vector<16x32xf32>, vector<32x160xf32>, vector<16x160xf32> -> vector<16x160xf32>
    %16 = vector.extract_strided_slice %15 {offsets = [0, 0], sizes = [16, 64], strides = [1, 1]} : vector<16x160xf32> to vector<16x64xf32>
    %17 = vector.extract_strided_slice %15 {offsets = [0, 64], sizes = [16, 32], strides = [1, 1]} : vector<16x160xf32> to vector<16x32xf32>
    %18 = vector.extract_strided_slice %15 {offsets = [0, 96], sizes = [16, 64], strides = [1, 1]} : vector<16x160xf32> to vector<16x64xf32>
    %c0_8 = arith.constant 0 : index
    %c0_9 = arith.constant 0 : index
    %19 = vector.load %arg7[%c0_8, %c0_9] : memref<16x64xf32, #tpu.memory_space<vmem>>, vector<16x64xf32>
    %20 = arith.mulf %16, %19 : vector<16x64xf32>
    %c0_10 = arith.constant 0 : index
    %c0_11 = arith.constant 0 : index
    %21 = vector.load %arg8[%c0_10, %c0_11] : memref<16x64xf32, #tpu.memory_space<vmem>>, vector<16x64xf32>
    %22 = arith.mulf %18, %21 : vector<16x64xf32>
    %23 = arith.addf %20, %22 : vector<16x64xf32>
    %24 = vector.extract_strided_slice %23 {offsets = [0, 0], sizes = [16, 32], strides = [1, 1]} : vector<16x64xf32> to vector<16x32xf32>
    %25 = vector.extract_strided_slice %23 {offsets = [0, 32], sizes = [16, 32], strides = [1, 1]} : vector<16x64xf32> to vector<16x32xf32>
    %c0_12 = arith.constant 0 : index
    %c0_13 = arith.constant 0 : index
    %26 = vector.load %arg9[%c0_12, %c0_13] : memref<64x32xf32, #tpu.memory_space<vmem>>, vector<64x32xf32>
    %27 = tpu.concatenate %25, %25, %25, %25 in 0 : vector<16x32xf32>, vector<16x32xf32>, vector<16x32xf32>, vector<16x32xf32> -> vector<64x32xf32>
    %28 = arith.mulf %27, %26 : vector<64x32xf32>
    %29 = tpu.concatenate %17, %17, %17, %17 in 0 : vector<16x32xf32>, vector<16x32xf32>, vector<16x32xf32>, vector<16x32xf32> -> vector<64x32xf32>
    %30 = arith.mulf %29, %26 : vector<64x32xf32>
    %cst_14 = arith.constant dense<0.000000e+00> : vector<16x64xf32>
    %31 = tpu.matmul %24, %28, %cst_14 {dimension_numbers = #tpu.dot_dimension_numbers<[1], [1], [0], [0], [0, 0, 1, 0], [], []>} : vector<16x32xf32>, vector<64x32xf32>, vector<16x64xf32> -> vector<16x64xf32>
    %c0_15 = arith.constant 0 : index
    %c0_16 = arith.constant 0 : index
    %32 = vector.load %arg10[%c0_15, %c0_16] : memref<16x64xf32, #tpu.memory_space<vmem>>, vector<16x64xf32>
    %33 = arith.addf %31, %32 : vector<16x64xf32>
    %cst_17 = arith.constant dense<0xFF800000> : vector<16xf32>
    %34 = vector.multi_reduction <maximumf>, %33, %cst_17 [1] : vector<16x64xf32> to vector<16xf32>
    %35 = vector.shape_cast %34 : vector<16xf32> to vector<16x1xf32>
    %36 = vector.broadcast %35 : vector<16x1xf32> to vector<16x64xf32>
    %37 = arith.subf %33, %36 : vector<16x64xf32>
    %38 = math.exp %37 : vector<16x64xf32>
    %cst_18 = arith.constant dense<0.000000e+00> : vector<16x32xf32>
    %39 = tpu.matmul %38, %30, %cst_18 {dimension_numbers = #tpu.dot_dimension_numbers<[1], [0], [0], [1], [0, 0, 1, 1], [], []>} : vector<16x64xf32>, vector<64x32xf32>, vector<16x32xf32> -> vector<16x32xf32>
    %cst_19 = arith.constant dense<0.000000e+00> : vector<16x32xf32>
    %40 = tpu.matmul %38, %26, %cst_19 {dimension_numbers = #tpu.dot_dimension_numbers<[1], [0], [0], [1], [0, 0, 1, 1], [], []>} : vector<16x64xf32>, vector<64x32xf32>, vector<16x32xf32> -> vector<16x32xf32>
    %41 = tpu.reciprocal %40 {approx = true} : vector<16x32xf32> -> vector<16x32xf32>
    %42 = arith.mulf %39, %41 : vector<16x32xf32>
    %c0_20 = arith.constant 0 : index
    %c0_21 = arith.constant 0 : index
    %43 = vector.load %arg4[%c0_20, %c0_21] : memref<32x32xf32, #tpu.memory_space<vmem>>, vector<32x32xf32>
    %cst_22 = arith.constant dense<0.000000e+00> : vector<16x32xf32>
    %44 = tpu.matmul %42, %43, %cst_22 {dimension_numbers = #tpu.dot_dimension_numbers<[1], [0], [0], [1], [0, 0, 1, 1], [], []>} : vector<16x32xf32>, vector<32x32xf32>, vector<16x32xf32> -> vector<16x32xf32>
    %45 = arith.addf %0, %44 : vector<16x32xf32>
    %c0_23 = arith.constant 0 : index
    %c0_24 = arith.constant 0 : index
    %46 = vector.load %arg2[%c0_23, %c0_24] : memref<1x32xf32, #tpu.memory_space<vmem>>, vector<1x32xf32>
    %47 = arith.mulf %45, %45 : vector<16x32xf32>
    %cst_25 = arith.constant dense<0.000000e+00> : vector<16xf32>
    %48 = vector.multi_reduction <add>, %47, %cst_25 [1] : vector<16x32xf32> to vector<16xf32>
    %49 = vector.shape_cast %48 : vector<16xf32> to vector<16x1xf32>
    %cst_26 = arith.constant 3.200000e+01 : f32
    %50 = vector.broadcast %cst_26 : f32 to vector<16x1xf32>
    %51 = arith.divf %49, %50 : vector<16x1xf32>
    %cst_27 = arith.constant 9.99999974E-6 : f32
    %52 = vector.broadcast %cst_27 : f32 to vector<16x1xf32>
    %53 = arith.addf %51, %52 : vector<16x1xf32>
    %54 = math.rsqrt %53 : vector<16x1xf32>
    %55 = vector.broadcast %54 : vector<16x1xf32> to vector<16x32xf32>
    %56 = arith.mulf %45, %55 : vector<16x32xf32>
    %57 = vector.broadcast %46 : vector<1x32xf32> to vector<16x32xf32>
    %58 = arith.mulf %56, %57 : vector<16x32xf32>
    %c0_28 = arith.constant 0 : index
    %c0_29 = arith.constant 0 : index
    %59 = vector.load %arg5[%c0_28, %c0_29] : memref<32x256xf32, #tpu.memory_space<vmem>>, vector<32x256xf32>
    %cst_30 = arith.constant dense<0.000000e+00> : vector<16x256xf32>
    %60 = tpu.matmul %58, %59, %cst_30 {dimension_numbers = #tpu.dot_dimension_numbers<[1], [0], [0], [1], [0, 0, 1, 1], [], []>} : vector<16x32xf32>, vector<32x256xf32>, vector<16x256xf32> -> vector<16x256xf32>
    %61 = vector.extract_strided_slice %60 {offsets = [0, 0], sizes = [16, 128], strides = [1, 1]} : vector<16x256xf32> to vector<16x128xf32>
    %62 = vector.extract_strided_slice %60 {offsets = [0, 128], sizes = [16, 128], strides = [1, 1]} : vector<16x256xf32> to vector<16x128xf32>
    %cst_31 = arith.constant 0.000000e+00 : f32
    %63 = vector.broadcast %cst_31 : f32 to vector<16x128xf32>
    %64 = arith.subf %63, %61 : vector<16x128xf32>
    %65 = math.exp %64 : vector<16x128xf32>
    %cst_32 = arith.constant 1.000000e+00 : f32
    %66 = vector.broadcast %cst_32 : f32 to vector<16x128xf32>
    %67 = arith.addf %66, %65 : vector<16x128xf32>
    %68 = tpu.reciprocal %67 {approx = true} : vector<16x128xf32> -> vector<16x128xf32>
    %69 = arith.mulf %61, %68 : vector<16x128xf32>
    %70 = arith.mulf %69, %62 : vector<16x128xf32>
    %c0_33 = arith.constant 0 : index
    %c0_34 = arith.constant 0 : index
    %71 = vector.load %arg6[%c0_33, %c0_34] : memref<128x32xf32, #tpu.memory_space<vmem>>, vector<128x32xf32>
    %cst_35 = arith.constant dense<0.000000e+00> : vector<16x32xf32>
    %72 = tpu.matmul %70, %71, %cst_35 {dimension_numbers = #tpu.dot_dimension_numbers<[1], [0], [0], [1], [0, 0, 1, 1], [], []>} : vector<16x128xf32>, vector<128x32xf32>, vector<16x32xf32> -> vector<16x32xf32>
    %73 = arith.addf %45, %72 : vector<16x32xf32>
    %c0_36 = arith.constant 0 : index
    %c0_37 = arith.constant 0 : index
    %74 = vector.load %arg11[%c0_36, %c0_37] : memref<16x32xf32, #tpu.memory_space<vmem>>, vector<16x32xf32>
    tpu.vector_store %arg11[%c0_36, %c0_37], %73 {strides = array<i32>} : memref<16x32xf32, #tpu.memory_space<vmem>>, vector<16x32xf32>,
    return
  }
}

</mosaic_0001>

<bundles_post_ra>
// kernel: tpu_custom_call.1
= control target key start
LH: loop header
LB: loop body
LE: loop exit
PB: predicated region body
PF: predicated region fallthrough
CT: control target
= control target key end

     0   :  { %vm44_vm0 = vcmask 261120   ;;  %s1723_s0 = inlined_call_operand.vmem [shape: f32[16,32], index: 0, kind: input, shape index: {}]   ;;  %s1724_s1 = inlined_call_operand.vmem [shape: f32[1,32], index: 1, kind: input, shape index: {}]   ;;  %s1725_s2 = inlined_call_operand.vmem [shape: f32[1,32], index: 2, kind: input, shape index: {}]   ;;  %s1726_s3 = inlined_call_operand.vmem [shape: f32[32,160], index: 3, kind: input, shape index: {}]   ;;  %s1727_s4 = inlined_call_operand.vmem [shape: f32[32,32], index: 4, kind: input, shape index: {}]   ;;  %s1728_s5 = inlined_call_operand.vmem [shape: f32[32,256], index: 5, kind: input, shape index: {}]   ;;  %s1729_s6 = inlined_call_operand.vmem [shape: f32[128,32], index: 6, kind: input, shape index: {}]   ;;  %s1730_s7 = inlined_call_operand.vmem [shape: f32[16,64], index: 7, kind: input, shape index: {}]   ;;  %s1731_s8 = inlined_call_operand.vmem [shape: f32[16,64], index: 8, kind: input, shape index: {}]   ;;  %s1732_s9 = inlined_call_operand.vmem [shape: f32[64,32], index: 9, kind: input, shape index: {}]   ;;  %s1733_s10 = inlined_call_operand.vmem [shape: f32[16,64], index: 10, kind: input, shape index: {}]   ;;  %s1734_s11 = inlined_call_operand.hbm [shape: f32[16,32], index: 11, kind: output, shape index: {}]  }
   0x1   :  { %v1387_v0 = vld [vmem:[%s1723_s0] sm:$0xff]  ;;  %v1392_v1 = vld [vmem:[%s1723_s0 + $0x8] sm:$0xff] }
   0x2   :  { %16 = vsyncpa [#allocation3], 0  ;;  %v42_v2 = vmul.f32 %v1387_v0, %v1387_v0  ;;  %v43_v3 = vmul.f32 %v1392_v1, %v1392_v1  ;;  %v69_v6 = vld [vmem:[%s1726_s3 + $0x8] sm:$0xff]  ;;  %v71_v7 = vld [vmem:[%s1726_s3 + $0x18] sm:$0xff]  ;;  %v1317_v13 = vmov 0.0   ;;  %s1318_s19 = smov 96  }
   0x3   :  { %v68_v8 = vld [vmem:[%s1726_s3] sm:$0xff]  ;;  %v1110_v9 = vpack.c.bf16 %v71_v7, %v69_v6  ;;  %v70_v10 = vld [vmem:[%s1726_s3 + $0x10] sm:$0xff]  ;;  %v73_v11 = vld [vmem:[%s1726_s3 + $0x28] sm:$0xff]  ;;  %146 = vmatprep.mubr.f32.mxu0 %v1317_v13  ;;  %s1319_s23 = smov 32   ;;  %vm398_vm2 = vcmask 523264  }
   0x4   :  { %v45_v4 = vsel %vm44_vm0, %v42_v2, 0.0  ;;  %v48_v5 = vsel %vm44_vm0, %v43_v3, 0.0  ;;  %v75_v12 = vld [vmem:[%s1726_s3 + $0x38] sm:$0xff]  ;;  %v1112_v14 = vpack.c.bf16 %v70_v10, %v68_v8  ;;  %v72_v16 = vld [vmem:[%s1726_s3 + $0x20] sm:$0xff]  ;;  %v74_v17 = vld [vmem:[%s1726_s3 + $0x30] sm:$0xff] }
   0x5   :  { %46 = vadd.xlane.f32.xlu0 %v45_v4  ;;  %v1114_v15 = vpack.c.bf16 %v75_v12, %v73_v11  ;;  %1111 = vmatprep.subr.bf16.mxu0 %v1110_v9  ;;  %v1116_v18 = vpack.c.bf16 %v74_v17, %v72_v16  ;;  %v163_v19 = vld [vmem:[%s1731_s8] sm:$0xff]  ;;  %v164_v20 = vld [vmem:[%s1731_s8 + $0x8] sm:$0xff]  ;;  %v1458_v42 = vld [vmem:[%s1732_s9 + $0x18] sm:$0xff] }
   0x6   :  { %1113 = vmatpush1.bf16.msra.mxu0 %v1112_v14  ;;  %167 = vrot.lane.b32.xlu1 %v163_v19, %s1318_s19  ;;  %v1436_v21 = vld [vmem:[%s1732_s9] sm:$0xff]  ;;  %v1467_v45 = vld [vmem:[%s1732_s9 + $0x28] sm:$0xff]  ;;  %v1475_v47 = vld [vmem:[%s1732_s9 + $0x38] sm:$0xff] }
   0x7   :  { %1115 = vmatprep.subr.bf16.mxu0 %v1114_v15  ;;  %v931_v29 = vld [vmem:[%s1724_s1] ss:$0 sm:$0xff]  ;;  %v1480_v48 = vld [vmem:[%s1732_s9 + $0x8] sm:$0xff]  ;;  %v1489_v49 = vld [vmem:[%s1732_s9 + $0x10] sm:$0xff] }
   0x8   :  { %v1496_v50 = vld [vmem:[%s1732_s9 + $0x20] sm:$0xff]  ;;  %v1503_v51 = vld [vmem:[%s1732_s9 + $0x30] sm:$0xff]  ;;  %v160_v60 = vld [vmem:[%s1730_s7 + $0x8] sm:$0xff] }
   0x9   :  { %49 = vadd.xlane.f32.xlu0 %v48_v5  ;;  %v159_v53 = vld [vmem:[%s1730_s7] sm:$0xff]  ;;  %s1320_s7 = smov 64   ;;  %vm1546_vm1 = vmpackc.low %vm44_vm0, %vm44_vm0 }
   0xa   :  { %1117 = vmatpush1.bf16.msra.mxu0 %v1116_v18  ;;  %169 = vrot.lane.b32.xlu1 %v164_v20, %s1318_s19 }
   0xe   :  { %211 = vrot.lane.b32.xlu1 %v1436_v21, %s1319_s23 }
  0x78   :  { %v168_v35 = vpop.permute.xlu1 %167 }
  0x7c   :  { %v170_v40 = vpop.permute.xlu1 %169 }
  0x80   :  { %v212_v52 = vpop.permute.xlu1 %211 }
  0x92   :  { %v47_v22 = vpop.xlane.xlu0 %46 }
  0x93   :  { %v52_v23 = vmul.f32 0.03125, %v47_v22 }
  0x95   :  { %v54_v24 = vadd.f32 1e-05, %v52_v23 }
  0x96   :  { %v50_v25 = vpop.xlane.xlu0 %49 }
  0x97   :  { %1269 = vrsqrt.f32 %v54_v24  ;;  %v53_v26 = vmul.f32 0.03125, %v50_v25 }
  0x99   :  { %v55_v27 = vadd.f32 1e-05, %v53_v26 }
  0x9b   :  { %1271 = vrsqrt.f32 %v55_v27 }
  0xa1   :  { %v1270_v28 = vpop.eup %1269 }
  0xa2   :  { %v58_v30 = vmul.f32 %v1270_v28, %v1387_v0 }
  0xa4   :  { %v66_v31 = vmul.f32 %v931_v29, %v58_v30 }
  0xa5   :  { %v1272_v32 = vpop.eup %1271 }
  0xa6   :  { %932 = vmatmul.mubr.msk.f32.vlgmr.msra.gmra.mrb[0].mxu0 %vm44_vm0, %v66_v31  ;;  %v59_v33 = vmul.f32 %v1272_v32, %v1392_v1 }
  0xa7   :  { %152 = vmatprep.mubr.f32.mxu0 %v1317_v13 }
  0xa8   :  { %v67_v34 = vmul.f32 %v931_v29, %v59_v33 }
  0xaa   :  { %933 = vmatmul.mubr.msk.f32.gmra.mrb[2].mxu0 %vm44_vm0, %v67_v34 }
 0x179   :  { %v1448_v36 = vpop.f32.mrb[0].mxu0 }
 0x17a   :  { %v150_v37 = vpop.f32.mrb[1].mxu0  ;;  %v173_v38 = vmul.f32 %v168_v35, %v1448_v36  ;;  %v161_v55 = vmul.f32 %v159_v53, %v1448_v36 }
 0x17b   :  { %v174_v39 = vmul.f32 %v168_v35, %v150_v37 }
 0x17c   :  { %181 = vrot.lane.b32.xlu0 %v173_v38, %s1319_s23 }
 0x17d   :  { %183 = vrot.lane.b32.xlu1 %v174_v39, %s1319_s23  ;;  %v1453_v41 = vpop.f32.mrb[2].mxu0 }
 0x17e   :  { %v175_v43 = vmul.f32 %v170_v40, %v1453_v41  ;;  %v156_v44 = vpop.f32.mrb[3].mxu0  ;;  %v162_v61 = vmul.f32 %v160_v60, %v1453_v41 }
 0x17f   :  { %v176_v46 = vmul.f32 %v170_v40, %v156_v44 }
 0x180   :  { %217 = vrot.lane.b32.xlu0 %v1458_v42, %s1319_s23 }
 0x181   :  { %185 = vrot.lane.b32.xlu1 %v175_v43, %s1319_s23 }
 0x184   :  { %221 = vrot.lane.b32.xlu0 %v1467_v45, %s1319_s23 }
 0x185   :  { %187 = vrot.lane.b32.xlu1 %v176_v46, %s1319_s23 }
 0x188   :  { %225 = vrot.lane.b32.xlu0 %v1475_v47, %s1319_s23 }
 0x189   :  { %213 = vrot.lane.b32.xlu1 %v1480_v48, %s1319_s23 }
 0x18d   :  { %215 = vrot.lane.b32.xlu1 %v1489_v49, %s1319_s23 }
 0x191   :  { %219 = vrot.lane.b32.xlu1 %v1496_v50, %s1319_s23 }
 0x195   :  { %223 = vrot.lane.b32.xlu1 %v1503_v51, %s1319_s23 }
 0x1ee   :  { %v182_v54 = vpop.permute.xlu0 %181 }
 0x1ef   :  { %v184_v56 = vpop.permute.xlu1 %183 }
 0x1f0   :  { %v189_v57 = vsel %vm44_vm0, %v182_v54, %v184_v56 }
 0x1f1   :  { %v193_v58 = vadd.f32 %v189_v57, %v161_v55 }
 0x1f2   :  { %v218_v2 = vpop.permute.xlu0 %217 }
 0x1f3   :  { %v186_v59 = vpop.permute.xlu1 %185  ;;  %1023 = vmatprep.mubr.msk.f32.mxu1 %vm44_vm0, %v193_v58  ;;  %v235_v5 = vmul.f32 %v212_v52, %v193_v58 }
 0x1f6   :  { %v222_v8 = vpop.permute.xlu0 %221 }
 0x1f7   :  { %v188_v62 = vpop.permute.xlu1 %187 }
 0x1f8   :  { %v190_v63 = vsel %vm44_vm0, %v186_v59, %v188_v62 }
 0x1f9   :  { %v1518_v3 = vadd.f32 %v190_v63, %v162_v61 }
 0x1fa   :  { %v226_v17 = vpop.permute.xlu0 %225 }
 0x1fb   :  { %v214_v4 = vpop.permute.xlu1 %213  ;;  %v238_v11 = vmul.f32 %v218_v2, %v1518_v3  ;;  %v240_v16 = vmul.f32 %v222_v8, %v1518_v3  ;;  %v242_v20 = vmul.f32 %v226_v17, %v1518_v3 }
 0x1fc   :  { %v236_v6 = vmul.f32 %v214_v4, %v1518_v3 }
 0x1fe   :  { %v1229_v7 = vpack.i.bf16 %v236_v6, %v235_v5 }
 0x1ff   :  { %v216_v9 = vpop.permute.xlu1 %215 }
 0x200   :  { %v237_v10 = vmul.f32 %v216_v9, %v193_v58  ;;  %1230 = vrot.lane.b32.xlu1 %v1229_v7, %s1318_s19 }
 0x202   :  { %v1234_v12 = vpack.i.bf16 %v238_v11, %v237_v10 }
 0x203   :  { %v220_v14 = vpop.permute.xlu1 %219 }
 0x204   :  { %v239_v15 = vmul.f32 %v220_v14, %v193_v58  ;;  %1235 = vrot.lane.b32.xlu0 %v1234_v12, %s1318_s19 }
 0x206   :  { %v1239_v18 = vpack.i.bf16 %v240_v16, %v239_v15 }
 0x207   :  { %v224_v19 = vpop.permute.xlu1 %223 }
 0x208   :  { %v241_v22 = vmul.f32 %v224_v19, %v193_v58  ;;  %1240 = vrot.lane.b32.xlu1 %v1239_v18, %s1318_s19 }
 0x20a   :  { %v1244_v23 = vpack.i.bf16 %v242_v20, %v241_v22 }
 0x20c   :  { %243 = vrot.lane.b32.xlu1 %v1436_v21, %s1320_s7  ;;  %1245 = vrot.lane.b32.xlu0 %v1244_v23, %s1318_s19 }
 0x210   :  { %247 = vrot.lane.b32.xlu1 %v1489_v49, %s1320_s7  ;;  %245 = vrot.lane.b32.xlu0 %v1480_v48, %s1320_s7 }
 0x214   :  { %251 = vrot.lane.b32.xlu1 %v1496_v50, %s1320_s7  ;;  %249 = vrot.lane.b32.xlu0 %v1458_v42, %s1320_s7 }
 0x218   :  { %255 = vrot.lane.b32.xlu1 %v1503_v51, %s1320_s7  ;;  %253 = vrot.lane.b32.xlu0 %v1467_v45, %s1320_s7 }
 0x21c   :  { %257 = vrot.lane.b32.xlu0 %v1475_v47, %s1320_s7 }
 0x272   :  { %v1231_v24 = vpop.permute.xlu1 %1230 }
 0x273   :  { %v1233_v25 = vunpack.i.h.bf16 %v1231_v24  ;;  %v1232_v26 = vunpack.i.l.bf16 %v1231_v24 }
 0x275   :  { %v1118_v28 = vpack.c.bf16 %v1233_v25, %v1232_v26 }
 0x276   :  { %v1236_v29 = vpop.permute.xlu0 %1235 }
 0x277   :  { %v1238_v30 = vunpack.i.h.bf16 %v1236_v29  ;;  %v1237_v31 = vunpack.i.l.bf16 %v1236_v29  ;;  %1120 = vmatprep.subr.msk.bf16.mxu1 %vm1546_vm1, %v1118_v28 }
 0x278   :  { %1123 = vmatpush3.bf16.xpose.msk.msra.mxu1 %vm1546_vm1, %v1118_v28 }
 0x279   :  { %v1124_v32 = vpack.c.bf16 %v1238_v30, %v1237_v31 }
 0x27a   :  { %v1241_v33 = vpop.permute.xlu1 %1240 }
 0x27b   :  { %v1243_v34 = vunpack.i.h.bf16 %v1241_v33  ;;  %v1242_v35 = vunpack.i.l.bf16 %v1241_v33  ;;  %1126 = vmatprep.subr.msk.bf16.mxu1 %vm1546_vm1, %v1124_v32 }
 0x27d   :  { %v1130_v39 = vpack.c.bf16 %v1243_v34, %v1242_v35 }
 0x27e   :  { %v244_v37 = vpop.permute.xlu1 %243  ;;  %v1246_v38 = vpop.permute.xlu0 %1245 }
 0x27f   :  { %v267_v44 = vmul.f32 %v244_v37, %v1448_v36  ;;  %v1248_v46 = vunpack.i.h.bf16 %v1246_v38  ;;  %v1247_v52 = vunpack.i.l.bf16 %v1246_v38 }
 0x280   :  { %1129 = vmatpush3.bf16.xpose.msk.msra.mxu1 %vm1546_vm1, %v1124_v32 }
 0x281   :  { %1132 = vmatprep.subr.msk.bf16.mxu1 %vm1546_vm1, %v1130_v39  ;;  %v1136_v57 = vpack.c.bf16 %v1248_v46, %v1247_v52  ;;  %v1166_v46 = vpack.c.bf16 %v1467_v45, %v1496_v50  ;;  %v605_v45 = vld [vmem:[%s1727_s4 + $0x10] sm:$0xff] }
 0x282   :  { %v248_v40 = vpop.permute.xlu1 %247  ;;  %v246_v43 = vpop.permute.xlu0 %245 }
 0x283   :  { %v268_v53 = vmul.f32 %v246_v43, %v1453_v41  ;;  %v269_v58 = vmul.f32 %v248_v40, %v1448_v36  ;;  %v1162_v43 = vpack.c.bf16 %v1458_v42, %v1489_v49  ;;  %v603_v42 = vld [vmem:[%s1727_s4] sm:$0xff] }
 0x285   :  { %v1249_v54 = vpack.i.bf16 %v268_v53, %v267_v44 }
 0x286   :  { %v252_v55 = vpop.permute.xlu1 %251  ;;  %v250_v56 = vpop.permute.xlu0 %249 }
 0x287   :  { %v271_v59 = vmul.f32 %v252_v55, %v1448_v36  ;;  %v270_v60 = vmul.f32 %v250_v56, %v1453_v41  ;;  %1250 = vrot.lane.b32.xlu0 %v1249_v54, %s1320_s7 }
 0x288   :  { %1135 = vmatpush3.bf16.xpose.msk.msra.mxu1 %vm1546_vm1, %v1130_v39  ;;  %v1158_v39 = vpack.c.bf16 %v1480_v48, %v1436_v21  ;;  %v1170_v21 = vpack.c.bf16 %v1475_v47, %v1503_v51  ;;  %v604_v48 = vld [vmem:[%s1727_s4 + $0x8] sm:$0xff]  ;;  %v606_v47 = vld [vmem:[%s1727_s4 + $0x18] sm:$0xff] }
 0x289   :  { %v1254_v61 = vpack.i.bf16 %v270_v60, %v269_v58  ;;  %1138 = vmatprep.subr.msk.bf16.mxu1 %vm1546_vm1, %v1136_v57  ;;  %v1174_v49 = vpack.c.bf16 %v604_v48, %v603_v42  ;;  %v1178_v50 = vpack.c.bf16 %v606_v47, %v605_v45  ;;  %v832_v48 = vld [vmem:[%s1729_s6 + $0x60] sm:$0xff]  ;;  %v834_v47 = vld [vmem:[%s1729_s6 + $0x70] sm:$0xff] }
 0x28a   :  { %v254_v62 = vpop.permute.xlu0 %253  ;;  %v256_v2 = vpop.permute.xlu1 %255 }
 0x28b   :  { %v272_v63 = vmul.f32 %v254_v62, %v1453_v41  ;;  %1255 = vrot.lane.b32.xlu1 %v1254_v61, %s1320_s7  ;;  %v273_v6 = vmul.f32 %v256_v2, %v1448_v36  ;;  %v276_v36 = vld [vmem:[%s1733_s10 + $0x8] sm:$0xff] }
 0x28d   :  { %v1259_v4 = vpack.i.bf16 %v272_v63, %v271_v59 }
 0x28e   :  { %v258_v5 = vpop.permute.xlu0 %257 }
 0x28f   :  { %v274_v7 = vmul.f32 %v258_v5, %v1453_v41  ;;  %v275_v41 = vld [vmem:[%s1733_s10] sm:$0xff] }
 0x290   :  { %1141 = vmatpush3.bf16.xpose.msk.msra.mxu1 %vm1546_vm1, %v1136_v57 }
 0x291   :  { %v1264_v8 = vpack.i.bf16 %v274_v7, %v273_v6  ;;  %v715_v7 = vld [vmem:[%s1728_s5] sm:$0xff] }
 0x297   :  { %1024 = vmatmul.mubr.msk.f32.vlgmr.msra.gmra.mrb[0].mxu1 %vm44_vm0, %v1518_v3 }
 0x2f9   :  { %v1251_v9 = vpop.permute.xlu0 %1250 }
 0x2fa   :  { %v1253_v10 = vunpack.i.h.bf16 %v1251_v9  ;;  %v1252_v11 = vunpack.i.l.bf16 %v1251_v9 }
 0x2fc   :  { %v1142_v12 = vpack.c.bf16 %v1253_v10, %v1252_v11  ;;  %v720_v10 = vld [vmem:[%s1728_s5 + $0x28] sm:$0xff]  ;;  %v722_v11 = vld [vmem:[%s1728_s5 + $0x38] sm:$0xff] }
 0x2fd   :  { %v1256_v14 = vpop.permute.xlu1 %1255 }
 0x2fe   :  { %v1258_v15 = vunpack.i.h.bf16 %v1256_v14  ;;  %v1257_v16 = vunpack.i.l.bf16 %v1256_v14  ;;  %1143 = vmatprep.subr.bf16.mxu0 %v1142_v12  ;;  %v719_v14 = vld [vmem:[%s1728_s5 + $0x20] sm:$0xff] }
 0x2ff   :  { %1145 = vmatpush3.bf16.msra.mxu0 %v1142_v12  ;;  %v1186_v12 = vpack.c.bf16 %v722_v11, %v720_v10 }
 0x300   :  { %v1146_v17 = vpack.c.bf16 %v1258_v15, %v1257_v16  ;;  %v721_v15 = vld [vmem:[%s1728_s5 + $0x30] sm:$0xff] }
 0x301   :  { %v1188_v16 = vpack.c.bf16 %v721_v15, %v719_v14 }
 0x302   :  { %1147 = vmatprep.subr.bf16.mxu0 %v1146_v17 }
 0x303   :  { %1149 = vmatpush3.bf16.msra.mxu0 %v1146_v17 }
 0x36a   :  { %v1025_v3 = vpop.f32.mrb[0].mxu1 }
 0x36b   :  { %v395_v18 = vadd.f32 %v1025_v3, %v276_v36  ;;  %v389_v19 = vpop.f32.mrb[1].mxu1 }
 0x36c   :  { %v390_v20 = vadd.f32 %v389_v19, %v275_v41 }
 0x36d   :  { %v402_v22 = vsel %vm398_vm2, %v395_v18, -inf }
 0x36e   :  { %403 = vmax.xlane.f32.xlu0 %v402_v22  ;;  %v399_v23 = vsel %vm398_vm2, %v390_v20, -inf }
 0x36f   :  { %400 = vmax.xlane.f32.xlu1 %v399_v23  ;;  %v950_v23 = vld [vmem:[%s1725_s2] ss:$0 sm:$0xff] }
 0x380   :  { %1260 = vrot.lane.b32.xlu1 %v1259_v4, %s1320_s7 }
 0x384   :  { %1265 = vrot.lane.b32.xlu0 %v1264_v8, %s1320_s7  ;;  %v717_v8 = vld [vmem:[%s1728_s5 + $0x10] sm:$0xff] }
 0x385   :  { %v1184_v9 = vpack.c.bf16 %v717_v8, %v715_v7 }
 0x3fb   :  { %v404_v24 = vpop.xlane.xlu0 %403 }
 0x3fc   :  { %v406_v25 = vsub.f32 %v395_v18, %v404_v24  ;;  %v401_v26 = vpop.xlane.xlu1 %400 }
 0x3fd   :  { %v405_v27 = vsub.f32 %v390_v20, %v401_v26 }
 0x3fe   :  { %v409_v28 = vmul.f32 1.442695, %v406_v25 }
 0x3ff   :  { %v407_v29 = vmul.f32 1.442695, %v405_v27  ;;  %v1266_v30 = vpop.permute.xlu0 %1265 }
 0x400   :  { %v1268_v31 = vunpack.i.h.bf16 %v1266_v30  ;;  %v1261_v32 = vpop.permute.xlu1 %1260  ;;  %v1267_v33 = vunpack.i.l.bf16 %v1266_v30 }
 0x401   :  { %1273 = vpow2.f32 %v407_v29  ;;  %v1263_v34 = vunpack.i.h.bf16 %v1261_v32  ;;  %v1262_v35 = vunpack.i.l.bf16 %v1261_v32  ;;  %v821_v29 = vld [vmem:[%s1729_s6 + $0x8] sm:$0xff] }
 0x402   :  { %1275 = vpow2.f32 %v409_v28  ;;  %v1154_v38 = vpack.c.bf16 %v1268_v31, %v1267_v33  ;;  %v820_v28 = vld [vmem:[%s1729_s6] sm:$0xff]  ;;  %v822_v31 = vld [vmem:[%s1729_s6 + $0x10] sm:$0xff] }
 0x403   :  { %v1150_v37 = vpack.c.bf16 %v1263_v34, %v1262_v35  ;;  %v1190_v30 = vpack.c.bf16 %v821_v29, %v820_v28  ;;  %v824_v33 = vld [vmem:[%s1729_s6 + $0x20] sm:$0xff]  ;;  %v825_v34 = vld [vmem:[%s1729_s6 + $0x28] sm:$0xff] }
 0x404   :  { %v1198_v35 = vpack.c.bf16 %v825_v34, %v824_v33 }
 0x405   :  { %1151 = vmatprep.subr.bf16.mxu0 %v1150_v37  ;;  %1191 = vmatprep.subr.bf16.mxu1 %v1190_v30 }
 0x406   :  { %1153 = vmatpush3.bf16.msra.mxu0 %v1150_v37  ;;  %1193 = vmatpush3.bf16.msra.mxu1 %v1190_v30  ;;  %v826_v37 = vld [vmem:[%s1729_s6 + $0x30] sm:$0xff] }
 0x407   :  { %1155 = vmatprep.subr.bf16.mxu0 %v1154_v38 }
 0x40a   :  { %1157 = vmatpush3.bf16.msra.mxu0 %v1154_v38  ;;  %v827_v38 = vld [vmem:[%s1729_s6 + $0x38] sm:$0xff] }
 0x40b   :  { %v1274_v40 = vpop.eup %1273  ;;  %1159 = vmatprep.subr.bf16.mxu0 %v1158_v39 }
 0x40c   :  { %v1276_v44 = vpop.eup %1275  ;;  %1042 = vmatprep.mubr.msk.f32.mxu0 %vm398_vm2, %v1274_v40 }
 0x40d   :  { %1043 = vmatmul.mubr.msk.f32.vlgmr.msra.gmra.mrb[4].mxu0 %vm398_vm2, %v1276_v44 }
 0x40e   :  { %1161 = vmatpush3.bf16.msra.mxu0 %v1158_v39  ;;  %1061 = vmatprep.mubr.msk.f32.mxu0 %vm398_vm2, %v1274_v40  ;;  %v1202_v39 = vpack.c.bf16 %v827_v38, %v826_v37  ;;  %v828_v40 = vld [vmem:[%s1729_s6 + $0x40] sm:$0xff] }
 0x40f   :  { %1163 = vmatprep.subr.bf16.mxu0 %v1162_v43 }
 0x412   :  { %1165 = vmatpush3.bf16.msra.mxu0 %v1162_v43  ;;  %v829_v43 = vld [vmem:[%s1729_s6 + $0x48] sm:$0xff] }
 0x413   :  { %1167 = vmatprep.subr.bf16.mxu0 %v1166_v46 }
 0x416   :  { %1169 = vmatpush3.bf16.msra.mxu0 %v1166_v46  ;;  %v830_v46 = vld [vmem:[%s1729_s6 + $0x50] sm:$0xff] }
 0x417   :  { %1171 = vmatprep.subr.bf16.mxu0 %v1170_v21 }
 0x41a   :  { %1173 = vmatpush3.bf16.msra.mxu0 %v1170_v21  ;;  %v831_v21 = vld [vmem:[%s1729_s6 + $0x58] sm:$0xff] }
 0x41b   :  { %1175 = vmatprep.subr.bf16.mxu0 %v1174_v49  ;;  %v1210_v42 = vpack.c.bf16 %v831_v21, %v830_v46 }
 0x41d   :  { %1062 = vmatmul.mubr.msk.f32.vlgmr.msra.gmra.mrb[6].mxu0 %vm398_vm2, %v1276_v44  ;;  %v1206_v44 = vpack.c.bf16 %v829_v43, %v828_v40 }
 0x41e   :  { %1177 = vmatpush3.bf16.msra.mxu0 %v1174_v49  ;;  %v833_v49 = vld [vmem:[%s1729_s6 + $0x68] sm:$0xff] }
 0x41f   :  { %1179 = vmatprep.subr.bf16.mxu0 %v1178_v50  ;;  %v1214_v45 = vpack.c.bf16 %v833_v49, %v832_v48 }
 0x422   :  { %1181 = vmatpush3.bf16.msra.mxu0 %v1178_v50  ;;  %v835_v50 = vld [vmem:[%s1729_s6 + $0x78] sm:$0xff] }
 0x4e0   :  { %v1044_v51 = vpop.f32.mrb[4].mxu0 }
 0x4e1   :  { %v515_v52 = vpop.f32.mrb[5].mxu0 }
 0x4f0   :  { %v1063_v53 = vpop.f32.mrb[6].mxu0 }
 0x4f1   :  { %1277 = vrcp.f32 %v1063_v53  ;;  %v590_v54 = vpop.f32.mrb[7].mxu0 }
 0x4f2   :  { %1279 = vrcp.f32 %v590_v54 }
 0x4fb   :  { %v1278_v55 = vpop.eup %1277 }
 0x4fc   :  { %v1280_v56 = vpop.eup %1279  ;;  %v602_v57 = vmul.f32 %v1278_v55, %v1044_v51  ;;  %v1218_v51 = vpack.c.bf16 %v835_v50, %v834_v47 }
 0x4fd   :  { %v601_v58 = vmul.f32 %v1280_v56, %v515_v52 }
 0x4ff   :  { %1072 = vmatprep.mubr.msk.f32.mxu0 %vm44_vm0, %v601_v58 }
 0x500   :  { %1073 = vmatmul.mubr.msk.f32.vlgmr.msra.gmra.mrb[8].mxu0 %vm44_vm0, %v602_v57 }
 0x501   :  { %793 = vmatprep.mubr.f32.mxu0 %v1317_v13 }
 0x5d3   :  { %v1074_v59 = vpop.f32.mrb[8].mxu0 }
 0x5d4   :  { %v1616_v60 = vadd.f32 %v1074_v59, %v1392_v1  ;;  %v679_v61 = vpop.f32.mrb[9].mxu0  ;;  %v716_v1 = vld [vmem:[%s1728_s5 + $0x8] sm:$0xff] }
 0x5d5   :  { %v1619_v62 = vadd.f32 %v679_v61, %v1387_v0  ;;  %v718_v0 = vld [vmem:[%s1728_s5 + $0x18] sm:$0xff] }
 0x5d6   :  { %v692_v63 = vmul.f32 %v1616_v60, %v1616_v60  ;;  %v1182_v6 = vpack.c.bf16 %v718_v0, %v716_v1 }
 0x5d7   :  { %v691_v2 = vmul.f32 %v1619_v62, %v1619_v62 }
 0x5d8   :  { %v696_v4 = vsel %vm44_vm0, %v692_v63, 0.0  ;;  %1183 = vmatprep.subr.bf16.mxu0 %v1182_v6 }
 0x5d9   :  { %697 = vadd.xlane.f32.xlu0 %v696_v4  ;;  %v693_v5 = vsel %vm44_vm0, %v691_v2, 0.0  ;;  %1185 = vmatpush1.bf16.msra.mxu0 %v1184_v9 }
 0x5da   :  { %694 = vadd.xlane.f32.xlu1 %v693_v5  ;;  %1187 = vmatprep.subr.bf16.mxu0 %v1186_v12 }
 0x5dd   :  { %1189 = vmatpush1.bf16.msra.mxu0 %v1188_v16 }
 0x666   :  { %v698_v17 = vpop.xlane.xlu0 %697 }
 0x667   :  { %v700_v36 = vmul.f32 0.03125, %v698_v17  ;;  %v695_v41 = vpop.xlane.xlu1 %694 }
 0x668   :  { %v699_v3 = vmul.f32 0.03125, %v695_v41 }
 0x669   :  { %v702_v18 = vadd.f32 1e-05, %v700_v36 }
 0x66a   :  { %v701_v19 = vadd.f32 1e-05, %v699_v3 }
 0x66b   :  { %1281 = vrsqrt.f32 %v702_v18 }
 0x66c   :  { %1283 = vrsqrt.f32 %v701_v19 }
 0x675   :  { %v1282_v20 = vpop.eup %1281 }
 0x676   :  { %v1284_v22 = vpop.eup %1283  ;;  %v706_v26 = vmul.f32 %v1282_v20, %v1616_v60 }
 0x677   :  { %v705_v24 = vmul.f32 %v1284_v22, %v1619_v62 }
 0x678   :  { %v714_v27 = vmul.f32 %v950_v23, %v706_v26 }
 0x679   :  { %v713_v25 = vmul.f32 %v950_v23, %v705_v24 }
 0x67b   :  { %951 = vmatmul.mubr.msk.f32.vlgmr.msra.gmra.mrb[10].mxu0 %vm44_vm0, %v713_v25 }
 0x67c   :  { %799 = vmatprep.mubr.f32.mxu0 %v1317_v13  ;;  %v823_v13 = vld [vmem:[%s1729_s6 + $0x18] sm:$0xff]  ;;  %s1321_s6 = smov [#allocation2]  }
 0x67d   :  { %v1194_v32 = vpack.c.bf16 %v823_v13, %v822_v31  ;;  %s920_s8 = sshll.u32 %s1321_s6, 4  ;;  %s921_s8 = int_to_ptr.vmem [resolvable:$true] %s920_s8 }
 0x67e   :  { %s1293_s2 = scalar_lea.vmem %s921_s8, 256  ;;  %p1298_p1 = scmp.lt.s32.totalorder %s921_s8, %s921_s8 }
 0x67f   :  { %952 = vmatmul.mubr.msk.f32.gmra.mrb[12].mxu0 %vm44_vm0, %v714_v27  ;;  %1195 = vmatprep.subr.bf16.mxu1 %v1194_v32  ;;  %p1294_p0 = scmp.ne.s32.totalorder %s921_s8, %s1293_s2  ;;  %p1299_p2 = scmp.lt.s32.totalorder %s1293_s2, %s1293_s2 }
 0x680   :  { %1197 = vmatpush3.bf16.msra.mxu1 %v1194_v32 }
 0x681   :  { %1199 = vmatprep.subr.bf16.mxu1 %v1198_v35  ;;  %p1300_p3 = por %p1299_p2, %p1298_p1 }
 0x683   :  { %p1301_p4 = pnand %p1300_p3, %p1294_p0 }
 0x684   :  { %1201 = vmatpush3.bf16.msra.mxu1 %v1198_v35 }
 0x685   :  { %1203 = vmatprep.subr.bf16.mxu1 %v1202_v39 }
 0x688   :  { %1205 = vmatpush3.bf16.msra.mxu1 %v1202_v39 }
 0x689   :  { %1207 = vmatprep.subr.bf16.mxu1 %v1206_v44 }
 0x68c   :  { %1209 = vmatpush3.bf16.msra.mxu1 %v1206_v44 }
 0x68d   :  { %1211 = vmatprep.subr.bf16.mxu1 %v1210_v42 }
 0x690   :  { %1213 = vmatpush3.bf16.msra.mxu1 %v1210_v42 }
 0x691   :  { %1215 = vmatprep.subr.bf16.mxu1 %v1214_v45 }
 0x694   :  { %1217 = vmatpush3.bf16.msra.mxu1 %v1214_v45 }
 0x695   :  { %1219 = vmatprep.subr.bf16.mxu1 %v1218_v51 }
 0x698   :  { %1221 = vmatpush3.bf16.msra.mxu1 %v1218_v51 }
 0x74e   :  { %v795_v52 = vpop.f32.mrb[10].mxu0 }
 0x74f   :  { %v806_v53 = vsub.f32 0.0, %v795_v52  ;;  %v797_v54 = vpop.f32.mrb[11].mxu0 }
 0x751   :  { %v808_v55 = vmul.f32 1.442695, %v806_v53 }
 0x752   :  { %v801_v56 = vpop.f32.mrb[12].mxu0 }
 0x753   :  { %1285 = vpow2.f32 %v808_v55  ;;  %v807_v57 = vsub.f32 0.0, %v801_v56  ;;  %v803_v58 = vpop.f32.mrb[13].mxu0 }
 0x755   :  { %v810_v59 = vmul.f32 1.442695, %v807_v57 }
 0x757   :  { %1287 = vpow2.f32 %v810_v59 }
 0x75d   :  { %v1286_v61 = vpop.eup %1285 }
 0x75e   :  { %v812_v63 = vadd.f32 1.0, %v1286_v61 }
 0x760   :  { %1289 = vrcp.f32 %v812_v63 }
 0x761   :  { %v1288_v2 = vpop.eup %1287 }
 0x762   :  { %v813_v4 = vadd.f32 1.0, %v1288_v2 }
 0x764   :  { %1291 = vrcp.f32 %v813_v4 }
 0x76a   :  { %v1290_v5 = vpop.eup %1289 }
 0x76b   :  { %v816_v1 = vmul.f32 %v1290_v5, %v795_v52 }
 0x76d   :  { %v818_v0 = vmul.f32 %v816_v1, %v797_v54 }
 0x76e   :  { %v1292_v6 = vpop.eup %1291 }
 0x76f   :  { %v817_v7 = vmul.f32 %v1292_v6, %v801_v56  ;;  %1107 = vmatprep.mubr.f32.mxu1 %v818_v0 }
 0x771   :  { %v819_v8 = vmul.f32 %v817_v7, %v803_v58 }
 0x773   :  { %1108 = vmatmul.mubr.f32.vlgmr.msra.gmra.mrb[2].mxu1 %v819_v8 }
 0x846   :  { %v1109_v9 = vpop.f32.mrb[2].mxu1 }
 0x847   :  { %v912_v10 = vadd.f32 %v1109_v9, %v1616_v60  ;;  %v902_v11 = vpop.f32.mrb[3].mxu1 }
 0x848   :  { %v911_v12 = vadd.f32 %v902_v11, %v1619_v62 }
 0x849   :  { %914 = vst.msk [vmem:[#allocation2 + $0x8] sm:$0xff] %vm44_vm0, %v912_v10 }
 0x84a   :  { %913 = vst.msk [vmem:[#allocation2] sm:$0xff] %vm44_vm0, %v911_v12 }
 0x84b   :  { %1304 = shalt.err (!%p1301_p4)
}
 0x84c   :  { %s1305_s24 = scalar_lea.hbm %s1734_s11, 256 }
 0x84d   :  { %p1306_p5 = scmp.ne.s32.totalorder %s1734_s11, %s1305_s24  ;;  %p1309_p6 = scmp.lt.u32.totalorder %s1305_s24, %s1734_s11 }
 0x84f   :  { %p1311_p7 = pnand %p1309_p6, %p1306_p5 }
 0x851   :  { %1314 = shalt.err (!%p1311_p7)
}
 0x852   :  { %s1322_s28 = smov 128   ;;  %s1323_s29 = smov 8  }
 0x853   :  { %926 = dma.vmem_to_hbm [thread:$0]  %s921_s8, 256, %s1734_s11, [#allocation3], %s1322_s28, %s1322_s28, %s1323_s29  }
 0x854   :  { %1315 = dma.done.wait [#allocation3], 256  }
 0x855   :  { %1316 = vsyncadd [#allocation3], 4294967040 }
 0x856   :  { %930 = vsyncpa [#allocation3], 1 }

</bundles_post_ra>
